<compile_context>
chip_gen: v6e
topology: v6e:2x2x1
jax: 0.10.0
libtpu: 0.0.40
codegen_flags: <defaults>
</compile_context>

<pallas_src>
import functools

import jax
import jax.numpy as jnp
import numpy as np
from jax.experimental import pallas as pl
from jax.experimental.pallas import tpu as pltpu


def _embed_kernel(tok_ref, table_ref, out_ref):
    # tok_ref:   (1, 1, TN) int32   -- lane-dense row of token ids
    # table_ref: (V, E)     float32 -- full embedding table, resident in VMEM
    # out_ref:   (TN, E)    float32
    ids = tok_ref[0]                                              # (1, TN)
    v = table_ref.shape[0]
    tn = ids.shape[1]
    iota = jax.lax.broadcasted_iota(jnp.int32, (v, tn), 0)        # (V, TN)
    onehot = (iota == ids).astype(table_ref.dtype)                # (V, TN)
    # Contract the V axis of both operands -> (TN, E); no XLU transpose.
    out_ref[...] = jax.lax.dot_general(
        onehot,
        table_ref[...],
        dimension_numbers=(((0,), (0,)), ((), ())),
        preferred_element_type=jnp.float32,
    ).astype(out_ref.dtype)


@functools.partial(jax.jit, static_argnames=("tile_n",))
def _embed_lookup_pallas(flat_ids, table, *, tile_n=512):
    """flat_ids: (N,) int -> (N, E) float32 via Pallas one-hot matmul."""
    n = flat_ids.shape[0]
    v, e = table.shape
    n_tiles = pl.cdiv(n, tile_n)
    n_pad = n_tiles * tile_n

    # Pad to a multiple of tile_n and lay out lane-dense: (n_tiles, 1, tile_n).
    ids_padded = jnp.zeros((n_pad,), jnp.int32).at[:n].set(
        flat_ids.astype(jnp.int32)
    )
    ids_3d = ids_padded.reshape(n_tiles, 1, tile_n)

    cost = pl.CostEstimate(
        flops=2 * n_pad * v * e,
        transcendentals=0,
        bytes_accessed=n_pad * 4 + v * e * 4 + n_pad * e * 4,
    )

    out = pl.pallas_call(
        _embed_kernel,
        out_shape=jax.ShapeDtypeStruct((n_pad, e), table.dtype),
        grid_spec=pltpu.PrefetchScalarGridSpec(
            num_scalar_prefetch=0,
            grid=(n_tiles,),
            in_specs=[
                pl.BlockSpec((1, 1, tile_n), lambda i: (i, 0, 0)),  # ids row
                pl.BlockSpec((v, e), lambda i: (0, 0)),             # table
            ],
            out_specs=pl.BlockSpec((tile_n, e), lambda i: (i, 0)),
        ),
        compiler_params=pltpu.CompilerParams(
            dimension_semantics=("parallel",),   # shards across v7x's 2 TCs
        ),
        cost_estimate=cost,
    )(ids_3d, table)
    return out[:n]


def embed_forward(inputs, table, *, force_pallas=None, min_pallas_tokens=1024,
                  tile_n=512):
    """Mirrors Embed.forward exactly (flatten / squeeze / unflatten logic)."""
    e = table.shape[1]
    *batch, L = inputs.shape
    batch = tuple(batch)

    if len(batch) > 1:
        flat = inputs.reshape((int(np.prod(batch)), L))   # flatten(0, len-1)
        if L == 1:
            flat = flat.reshape((flat.shape[0],))         # squeeze(-1)
        embedded_shape = flat.shape + (e,)
        final_shape = batch + embedded_shape[1:]          # unflatten(0, batch)
    else:
        flat = inputs
        embedded_shape = inputs.shape + (e,)
        final_shape = embedded_shape

    flat_ids = flat.reshape(-1)
    n = flat_ids.shape[0]
    use_pallas = (n >= min_pallas_tokens) if force_pallas is None else force_pallas

    if use_pallas:
        out = _embed_lookup_pallas(flat_ids, table, tile_n=tile_n)
    else:
        # Tiny-N fast path: XLA's native gather beats kernel launch + pad/slice.
        out = jnp.take(table, flat_ids.astype(jnp.int32), axis=0)

    return out.reshape(final_shape)


if __name__ == "__main__":
    input_size = 32       # vocab
    embedding_size = 128

    key = jax.random.PRNGKey(0)
    k_w, k_tok1, k_tok2, k_tok3 = jax.random.split(key, 4)

    # torch.nn.Embedding default init: N(0, 1)
    table = jax.random.normal(k_w, (input_size, embedding_size), jnp.float32)

    # Small RL-training-style input: (batch=2, time=8, L=1) integer token ids
    x_train_small = jax.random.randint(k_tok1, (2, 8, 1), 0, input_size, jnp.int32)
    # Small RL-inference-style input: (batch=2, L=8)
    x_infer_small = jax.random.randint(k_tok2, (2, 8), 0, input_size, jnp.int32)
    # Larger RL-training-style input to exercise the real Pallas path
    # (8*256 = 2048 tokens -> grid of 4 parallel 512-token tiles).
    x_train_big = jax.random.randint(k_tok3, (8, 256, 1), 0, input_size, jnp.int32)

    # Force the Pallas kernel on the small shapes (checks padding path) ...
    out_train_small = jax.block_until_ready(
        embed_forward(x_train_small, table, force_pallas=True))
    out_infer_small = jax.block_until_ready(
        embed_forward(x_infer_small, table, force_pallas=True))
    # ... and also exercise the default dispatch (fallback for tiny N,
    # Pallas for the big one).
    out_infer_small_auto = jax.block_until_ready(
        embed_forward(x_infer_small, table))
    out_train_big = jax.block_until_ready(
        embed_forward(x_train_big, table))

    # References: plain-JAX gather.
    ref_train_small = jnp.take(table, x_train_small[..., 0], axis=0)  # (2, 8, E)
    ref_infer_small = jnp.take(table, x_infer_small, axis=0)          # (2, 8, E)
    ref_train_big = jnp.take(table, x_train_big[..., 0], axis=0)      # (8, 256, E)

    assert out_train_small.shape == (2, 8, embedding_size), out_train_small.shape
    assert out_infer_small.shape == (2, 8, embedding_size), out_infer_small.shape
    assert out_train_big.shape == (8, 256, embedding_size), out_train_big.shape

    np.testing.assert_allclose(np.asarray(out_train_small),
                               np.asarray(ref_train_small), rtol=1e-6, atol=1e-6)
    np.testing.assert_allclose(np.asarray(out_infer_small),
                               np.asarray(ref_infer_small), rtol=1e-6, atol=1e-6)
    np.testing.assert_allclose(np.asarray(out_infer_small_auto),
                               np.asarray(ref_infer_small), rtol=1e-6, atol=1e-6)
    np.testing.assert_allclose(np.asarray(out_train_big),
                               np.asarray(ref_train_big), rtol=1e-6, atol=1e-6)

    print("KERNEL_OK")
</pallas_src>

<mosaic_0001>
module attributes {stable_mosaic.version = 11 : i64} {
  func.func @_embed_kernel(%arg0: i32, %arg1: memref<1x1x512xi32, #tpu.memory_space<vmem>>, %arg2: memref<32x128xf32, #tpu.memory_space<vmem>>, %arg3: memref<512x128xf32, #tpu.memory_space<vmem>>) attributes {dimension_semantics = [#tpu.dimension_semantics<parallel>], iteration_bounds = array<i64: 1>, scalar_prefetch = 0 : i64, scratch_operands = 0 : i64, tpu.core_type = #tpu.core_type<tc>, window_params = [{transform_indices = @transform_0, window_bounds = array<i64: 1, 1, 512>}, {pipeline_mode = #tpu.pipeline_mode<synchronous>, transform_indices = @transform_1, window_bounds = array<i64: 32, 128>}, {transform_indices = @transform_2, window_bounds = array<i64: 512, 128>}]} {
    %c0 = arith.constant 0 : index
    %c0_0 = arith.constant 0 : index
    %c0_1 = arith.constant 0 : index
    %0 = vector.load %arg1[%c0, %c0_0, %c0_1] : memref<1x1x512xi32, #tpu.memory_space<vmem>>, vector<1x1x512xi32>
    %1 = vector.shape_cast %0 : vector<1x1x512xi32> to vector<1x512xi32>
    %2 = tpu.iota {dimensions = array<i32: 0>} : vector<32x512xi32>
    %3 = vector.broadcast %1 : vector<1x512xi32> to vector<32x512xi32>
    %4 = arith.cmpi eq, %2, %3 : vector<32x512xi32>
    %5 = arith.extui %4 : vector<32x512xi1> to vector<32x512xi32>
    %6 = arith.sitofp %5 : vector<32x512xi32> to vector<32x512xf32>
    %c0_2 = arith.constant 0 : index
    %c0_3 = arith.constant 0 : index
    %7 = vector.load %arg2[%c0_2, %c0_3] : memref<32x128xf32, #tpu.memory_space<vmem>>, vector<32x128xf32>
    %cst = arith.constant dense<0.000000e+00> : vector<512x128xf32>
    %8 = tpu.matmul %6, %7, %cst {dimension_numbers = #tpu.dot_dimension_numbers<[0], [0], [1], [1], [0, 1, 1, 1], [], []>} : vector<32x512xf32>, vector<32x128xf32>, vector<512x128xf32> -> vector<512x128xf32>
    %c0_4 = arith.constant 0 : index
    %c0_5 = arith.constant 0 : index
    %9 = vector.load %arg3[%c0_4, %c0_5] : memref<512x128xf32, #tpu.memory_space<vmem>>, vector<512x128xf32>
    tpu.vector_store %arg3[%c0_4, %c0_5], %8 {strides = array<i32>} : memref<512x128xf32, #tpu.memory_space<vmem>>, vector<512x128xf32>,
    return
  }
  func.func @transform_0(%arg0: i32) -> (i32, i32, i32) {
    %c0_i32 = arith.constant 0 : i32
    %c0_i32_0 = arith.constant 0 : i32
    %c0_i32_1 = arith.constant 0 : i32
    return %arg0, %c0_i32, %c0_i32_0 : i32, i32, i32
  }
  func.func @transform_1(%arg0: i32) -> (i32, i32) {
    %c0_i32 = arith.constant 0 : i32
    %c0_i32_0 = arith.constant 0 : i32
    %c0_i32_1 = arith.constant 0 : i32
    return %c0_i32, %c0_i32_0 : i32, i32
  }
  func.func @transform_2(%arg0: i32) -> (i32, i32) {
    %c0_i32 = arith.constant 0 : i32
    %c0_i32_0 = arith.constant 0 : i32
    return %arg0, %c0_i32 : i32, i32
  }
}

</mosaic_0001>

<bundles_post_ra>
// kernel: _embed_lookup_pallas.1
= control target key start
LH: loop header
LB: loop body
LE: loop exit
PB: predicated region body
PF: predicated region fallthrough
CT: control target
= control target key end

     0   :  { %7 = vsyncpa [#allocation3], 0  ;;  %s1336_s9 = smov [#allocation2]   ;;  %s1697_s0 = inlined_call_operand.vmem [shape: s32[1,1,512], index: 0, kind: input, shape index: {}]   ;;  %s1698_s1 = inlined_call_operand.hbm [shape: f32[32,128], index: 1, kind: input, shape index: {}]   ;;  %s1699_s2 = inlined_call_operand.vmem [shape: f32[512,128], index: 2, kind: output, shape index: {}]  }
   0x1   :  { %s15_s10 = sshll.u32 %s1336_s9, 4  ;;  %s16_s10 = int_to_ptr.vmem [resolvable:$true] %s15_s10 }
   0x2   :  { %s1322_s11 = scalar_lea.vmem %s16_s10, 512  ;;  %p1327_p1 = scmp.lt.s32.totalorder %s16_s10, %s16_s10 }
   0x3   :  { %p1323_p0 = scmp.ne.s32.totalorder %s16_s10, %s1322_s11  ;;  %p1328_p2 = scmp.lt.s32.totalorder %s1322_s11, %s1322_s11 }
   0x5   :  { %p1329_p3 = por %p1328_p2, %p1327_p1 }
   0x7   :  { %p1330_p4 = pnand %p1329_p3, %p1323_p0 }
   0x9   :  { %1333 = shalt.err (!%p1330_p4)
}
   0xa   :  { %s1337_s12 = smov 128   ;;  %s1338_s13 = smov 8  }
   0xb   :  { %21 = dma.hbm_to_vmem [thread:$0]  %s1698_s1, 512, %s16_s10, [#allocation3], %s1337_s12, %s1337_s12, %s1338_s13  }
   0xc   :  { %1334 = dma.done.wait [#allocation3], 512  }
   0xd   :  { %1335 = vsyncadd [#allocation3], 4294966784  ;;  %v26_v0 = vlaneseq  ;;  %v25_v7 = vld [vmem:[%s1697_s0] sm:$0xf]  ;;  %v98_v8 = vld [vmem:[#allocation2 + $0x18] sm:$0xff]  ;;  %v1339_v16 = vmov 0.0  }
   0xe   :  { %1022 = vmatprep.subr.mxu0 %v98_v8  ;;  %1126 = vmatprep.subr.mxu1 %v98_v8  ;;  %v97_v15 = vld [vmem:[#allocation2 + $0x10] sm:$0xff]  ;;  %v96_v21 = vld [vmem:[#allocation2 + $0x8] sm:$0xff]  ;;  %v95_v26 = vld [vmem:[#allocation2] sm:$0xff] }
   0xf   :  { %v27_v1 = vshrl.u32 %v26_v0, 7  ;;  %1023 = vmatpush3.msra.mxu0 %v98_v8  ;;  %1130 = vmatpush3.msra.mxu1 %v98_v8 }
  0x10   :  { %1024 = vmatprep.subr.mxu0 %v97_v15  ;;  %1127 = vmatprep.subr.mxu1 %v97_v15 }
  0x11   :  { %v33_v2 = vsub.s32 0, %v27_v1  ;;  %v41_v3 = vsub.s32 2, %v27_v1  ;;  %v37_v4 = vsub.s32 1, %v27_v1  ;;  %v45_v5 = vsub.s32 3, %v27_v1  ;;  %1025 = vmatpush3.msra.mxu0 %v97_v15  ;;  %1131 = vmatpush3.msra.mxu1 %v97_v15 }
  0x12   :  { %v28_v6 = vadd.s32 8, %v27_v1  ;;  %v29_v11 = vadd.s32 16, %v27_v1  ;;  %v1361_v12 = vadd.s32 24, %v27_v1  ;;  %1026 = vmatprep.subr.mxu0 %v96_v21  ;;  %1128 = vmatprep.subr.mxu1 %v96_v21 }
  0x13   :  { %v34_v9 = vrot.slane %v25_v7, %v33_v2  ;;  %v42_v10 = vrot.slane %v25_v7, %v41_v3  ;;  %v1363_v13 = vrot.slane %v25_v7, %v37_v4  ;;  %v1365_v14 = vrot.slane %v25_v7, %v45_v5  ;;  %1027 = vmatpush3.msra.mxu0 %v96_v21 }
  0x14   :  { %1132 = vmatpush3.msra.mxu1 %v96_v21  ;;  %1028 = vmatprep.subr.mxu0 %v95_v26 }
  0x15   :  { %vm47_vm0 = vcmp.eq.s32.totalorder %v27_v1, %v34_v9  ;;  %vm49_vm1 = vcmp.eq.s32.totalorder %v27_v1, %v42_v10  ;;  %vm51_vm2 = vcmp.eq.s32.totalorder %v28_v6, %v34_v9  ;;  %vm53_vm3 = vcmp.eq.s32.totalorder %v28_v6, %v42_v10  ;;  %1129 = vmatprep.subr.mxu1 %v95_v26 }
  0x16   :  { %v874_v17 = vsel %vm47_vm0, 1.0, %v1339_v16  ;;  %v876_v18 = vsel %vm49_vm1, 1.0, %v1339_v16  ;;  %v878_v19 = vsel %vm51_vm2, 1.0, %v1339_v16  ;;  %v880_v20 = vsel %vm53_vm3, 1.0, %v1339_v16  ;;  %1029 = vmatpush3.msra.mxu0 %v95_v26  ;;  %1133 = vmatpush3.msra.mxu1 %v95_v26 }
  0x17   :  { %v1138_v22 = vpack.i.bf16 %v876_v18, %v874_v17  ;;  %vm55_vm4 = vcmp.eq.s32.totalorder %v29_v11, %v34_v9  ;;  %vm57_vm5 = vcmp.eq.s32.totalorder %v29_v11, %v42_v10  ;;  %v1140_v23 = vpack.i.bf16 %v880_v20, %v878_v19 }
  0x18   :  { %v882_v24 = vsel %vm55_vm4, 1.0, %v1339_v16  ;;  %v884_v25 = vsel %vm57_vm5, 1.0, %v1339_v16  ;;  %vm48_vm6 = vcmp.eq.s32.totalorder %v27_v1, %v1363_v13  ;;  %vm59_vm7 = vcmp.eq.s32.totalorder %v1361_v12, %v34_v9 }
  0x19   :  { %1139 = vxpose.xlu0.b32.start [1/4] (short) %v1138_v22, 128  ;;  %vm50_vm8 = vcmp.eq.s32.totalorder %v27_v1, %v1365_v14  ;;  %v875_v27 = vsel %vm48_vm6, 1.0, %v1339_v16  ;;  %vm52_vm9 = vcmp.eq.s32.totalorder %v28_v6, %v1363_v13  ;;  %vm61_vm10 = vcmp.eq.s32.totalorder %v1361_v12, %v42_v10 }
  0x1a   :  { %v877_v28 = vsel %vm50_vm8, 1.0, %v1339_v16  ;;  %vm54_vm11 = vcmp.eq.s32.totalorder %v28_v6, %v1365_v14  ;;  %v879_v29 = vsel %vm52_vm9, 1.0, %v1339_v16  ;;  %vm56_vm12 = vcmp.eq.s32.totalorder %v29_v11, %v1363_v13 }
  0x1b   :  { %v1226_v30 = vpack.i.bf16 %v877_v28, %v875_v27  ;;  %v881_v31 = vsel %vm54_vm11, 1.0, %v1339_v16  ;;  %vm58_vm13 = vcmp.eq.s32.totalorder %v29_v11, %v1365_v14  ;;  %v1142_v32 = vpack.i.bf16 %v884_v25, %v882_v24 }
  0x1c   :  { %v886_v33 = vsel %vm59_vm7, 1.0, %v1339_v16  ;;  %v888_v34 = vsel %vm61_vm10, 1.0, %v1339_v16  ;;  %v1228_v35 = vpack.i.bf16 %v881_v31, %v879_v29  ;;  %v883_v36 = vsel %vm56_vm12, 1.0, %v1339_v16 }
  0x1d   :  { %1141 = vxpose.xlu0.b32.cont [2/4] (short) %v1140_v23, 128  ;;  %1227 = vxpose.xlu1.b32.start [1/4] (short) %v1226_v30, 128  ;;  %v885_v37 = vsel %vm58_vm13, 1.0, %v1339_v16  ;;  %vm60_vm14 = vcmp.eq.s32.totalorder %v1361_v12, %v1363_v13  ;;  %vm62_vm15 = vcmp.eq.s32.totalorder %v1361_v12, %v1365_v14  ;;  %v1144_v38 = vpack.i.bf16 %v888_v34, %v886_v33 }
  0x1e   :  { %v1230_v39 = vpack.i.bf16 %v885_v37, %v883_v36  ;;  %v887_v40 = vsel %vm60_vm14, 1.0, %v1339_v16  ;;  %v889_v41 = vsel %vm62_vm15, 1.0, %v1339_v16  ;;  %vm227_vm0 = vcmask 261120  }
  0x1f   :  { %v1232_v42 = vpack.i.bf16 %v889_v41, %v887_v40 }
  0x21   :  { %1143 = vxpose.xlu0.b32.cont [3/4] (short) %v1142_v32, 128  ;;  %1229 = vxpose.xlu1.b32.cont [2/4] (short) %v1228_v35, 128 }
  0x25   :  { %1145 = vxpose.xlu0.b32.end [4/4] (short) %v1144_v38, 128  ;;  %1231 = vxpose.xlu1.b32.cont [3/4] (short) %v1230_v39, 128 }
  0x29   :  { %1233 = vxpose.xlu1.b32.end [4/4] (short) %v1232_v42, 128 }
  0x95   :  { %v1146_v43 = vpop.trf.xlu0 }
  0x96   :  { %v1147_v44 = vunpack.i.l.bf16 %v1146_v43  ;;  %v1150_v45 = vunpack.i.h.bf16 %v1146_v43 }
  0x98   :  { %1030 = vmatprep.mubr.msk.f32.mxu0 %vm227_vm0, %v1147_v44  ;;  %1078 = vmatprep.mubr.msk.f32.mxu1 %vm227_vm0, %v1150_v45 }
  0x99   :  { %v1151_v46 = vpop.trf.xlu0  ;;  %v1383_v49 = vpop.trf.xlu1 }
  0x9a   :  { %v1155_v47 = vunpack.i.h.bf16 %v1151_v46  ;;  %v1152_v48 = vunpack.i.l.bf16 %v1151_v46  ;;  %v1238_v42 = vunpack.i.h.bf16 %v1383_v49  ;;  %v1235_v43 = vunpack.i.l.bf16 %v1383_v49 }
  0x9c   :  { %1031 = vmatmul.mubr.msk.f32.vlgmr.msra.gmra.mxu0 %vm227_vm0, %v1152_v48  ;;  %1079 = vmatmul.mubr.msk.f32.vlgmr.msra.gmra.mxu1 %vm227_vm0, %v1155_v47 }
  0x9d   :  { %v1156_v50 = vpop.trf.xlu0  ;;  %v1387_v53 = vpop.trf.xlu1 }
  0x9e   :  { %v1160_v51 = vunpack.i.h.bf16 %v1156_v50  ;;  %v1157_v52 = vunpack.i.l.bf16 %v1156_v50  ;;  %v1243_v44 = vunpack.i.h.bf16 %v1387_v53  ;;  %v1240_v45 = vunpack.i.l.bf16 %v1387_v53 }
  0xa0   :  { %1033 = vmatprep.mubr.msk.f32.mxu0 %vm227_vm0, %v1157_v52  ;;  %1081 = vmatprep.mubr.msk.f32.mxu1 %vm227_vm0, %v1160_v51 }
  0xa1   :  { %v1161_v54 = vpop.trf.xlu0  ;;  %v1391_v57 = vpop.trf.xlu1 }
  0xa2   :  { %v1165_v55 = vunpack.i.h.bf16 %v1161_v54  ;;  %v1162_v56 = vunpack.i.l.bf16 %v1161_v54  ;;  %v1248_v47 = vunpack.i.h.bf16 %v1391_v57  ;;  %v1245_v48 = vunpack.i.l.bf16 %v1391_v57 }
  0xa4   :  { %1034 = vmatmul.mubr.msk.f32.gmra.mxu0 %vm227_vm0, %v1162_v56  ;;  %1082 = vmatmul.mubr.msk.f32.gmra.mxu1 %vm227_vm0, %v1165_v55 }
  0xa5   :  { %v1166_v58 = vpop.trf.xlu0  ;;  %v1395_v61 = vpop.trf.xlu1 }
  0xa6   :  { %v1170_v59 = vunpack.i.h.bf16 %v1166_v58  ;;  %v1167_v60 = vunpack.i.l.bf16 %v1166_v58  ;;  %v1253_v49 = vunpack.i.h.bf16 %v1395_v61  ;;  %v1250_v50 = vunpack.i.l.bf16 %v1395_v61 }
  0xa8   :  { %1036 = vmatprep.mubr.msk.f32.mxu0 %vm227_vm0, %v1167_v60  ;;  %1084 = vmatprep.mubr.msk.f32.mxu1 %vm227_vm0, %v1170_v59 }
  0xa9   :  { %v1171_v62 = vpop.trf.xlu0  ;;  %v1399_v1 = vpop.trf.xlu1 }
  0xaa   :  { %v1175_v63 = vunpack.i.h.bf16 %v1171_v62  ;;  %v1172_v0 = vunpack.i.l.bf16 %v1171_v62  ;;  %v1258_v51 = vunpack.i.h.bf16 %v1399_v1  ;;  %v1255_v52 = vunpack.i.l.bf16 %v1399_v1 }
  0xac   :  { %1037 = vmatmul.mubr.msk.f32.gmra.mxu0 %vm227_vm0, %v1172_v0  ;;  %1085 = vmatmul.mubr.msk.f32.gmra.mxu1 %vm227_vm0, %v1175_v63 }
  0xad   :  { %v1176_v2 = vpop.trf.xlu0  ;;  %v1403_v5 = vpop.trf.xlu1 }
  0xae   :  { %v1180_v3 = vunpack.i.h.bf16 %v1176_v2  ;;  %v1177_v4 = vunpack.i.l.bf16 %v1176_v2  ;;  %v1263_v53 = vunpack.i.h.bf16 %v1403_v5  ;;  %v1260_v54 = vunpack.i.l.bf16 %v1403_v5 }
  0xb0   :  { %1039 = vmatprep.mubr.msk.f32.mxu0 %vm227_vm0, %v1177_v4  ;;  %1087 = vmatprep.mubr.msk.f32.mxu1 %vm227_vm0, %v1180_v3 }
  0xb1   :  { %v1181_v6 = vpop.trf.xlu0  ;;  %v1407_v9 = vpop.trf.xlu1 }
  0xb2   :  { %v1185_v7 = vunpack.i.h.bf16 %v1181_v6  ;;  %v1182_v8 = vunpack.i.l.bf16 %v1181_v6  ;;  %v1268_v55 = vunpack.i.h.bf16 %v1407_v9  ;;  %v1265_v56 = vunpack.i.l.bf16 %v1407_v9 }
  0xb4   :  { %1040 = vmatmul.mubr.msk.f32.gmra.mxu0 %vm227_vm0, %v1182_v8  ;;  %1088 = vmatmul.mubr.msk.f32.gmra.mxu1 %vm227_vm0, %v1185_v7 }
  0xb5   :  { %v1186_v10 = vpop.trf.xlu0  ;;  %v1411_v13 = vpop.trf.xlu1 }
  0xb6   :  { %v1190_v11 = vunpack.i.h.bf16 %v1186_v10  ;;  %v1187_v12 = vunpack.i.l.bf16 %v1186_v10  ;;  %v1273_v57 = vunpack.i.h.bf16 %v1411_v13  ;;  %v1270_v58 = vunpack.i.l.bf16 %v1411_v13 }
  0xb8   :  { %1042 = vmatprep.mubr.msk.f32.mxu0 %vm227_vm0, %v1187_v12  ;;  %1090 = vmatprep.mubr.msk.f32.mxu1 %vm227_vm0, %v1190_v11 }
  0xb9   :  { %v1191_v14 = vpop.trf.xlu0  ;;  %v1415_v17 = vpop.trf.xlu1 }
  0xba   :  { %v1195_v15 = vunpack.i.h.bf16 %v1191_v14  ;;  %v1192_v16 = vunpack.i.l.bf16 %v1191_v14  ;;  %v1278_v59 = vunpack.i.h.bf16 %v1415_v17  ;;  %v1275_v60 = vunpack.i.l.bf16 %v1415_v17 }
  0xbc   :  { %1043 = vmatmul.mubr.msk.f32.gmra.mxu0 %vm227_vm0, %v1192_v16  ;;  %1091 = vmatmul.mubr.msk.f32.gmra.mxu1 %vm227_vm0, %v1195_v15 }
  0xbd   :  { %v1196_v18 = vpop.trf.xlu0  ;;  %v1419_v21 = vpop.trf.xlu1 }
  0xbe   :  { %v1200_v19 = vunpack.i.h.bf16 %v1196_v18  ;;  %v1197_v20 = vunpack.i.l.bf16 %v1196_v18  ;;  %v1283_v61 = vunpack.i.h.bf16 %v1419_v21  ;;  %v1280_v62 = vunpack.i.l.bf16 %v1419_v21 }
  0xc0   :  { %1045 = vmatprep.mubr.msk.f32.mxu0 %vm227_vm0, %v1197_v20  ;;  %1093 = vmatprep.mubr.msk.f32.mxu1 %vm227_vm0, %v1200_v19 }
  0xc1   :  { %v1201_v22 = vpop.trf.xlu0  ;;  %v1423_v25 = vpop.trf.xlu1 }
  0xc2   :  { %v1205_v23 = vunpack.i.h.bf16 %v1201_v22  ;;  %v1202_v24 = vunpack.i.l.bf16 %v1201_v22  ;;  %v1288_v63 = vunpack.i.h.bf16 %v1423_v25  ;;  %v1285_v0 = vunpack.i.l.bf16 %v1423_v25 }
  0xc4   :  { %1046 = vmatmul.mubr.msk.f32.gmra.mxu0 %vm227_vm0, %v1202_v24  ;;  %1094 = vmatmul.mubr.msk.f32.gmra.mxu1 %vm227_vm0, %v1205_v23 }
  0xc5   :  { %v1206_v26 = vpop.trf.xlu0  ;;  %v1427_v29 = vpop.trf.xlu1 }
  0xc6   :  { %v1210_v27 = vunpack.i.h.bf16 %v1206_v26  ;;  %v1207_v28 = vunpack.i.l.bf16 %v1206_v26  ;;  %v1293_v1 = vunpack.i.h.bf16 %v1427_v29  ;;  %v1290_v2 = vunpack.i.l.bf16 %v1427_v29 }
  0xc8   :  { %1048 = vmatprep.mubr.msk.f32.mxu0 %vm227_vm0, %v1207_v28  ;;  %1096 = vmatprep.mubr.msk.f32.mxu1 %vm227_vm0, %v1210_v27 }
  0xc9   :  { %v1211_v30 = vpop.trf.xlu0  ;;  %v1431_v33 = vpop.trf.xlu1 }
  0xca   :  { %v1215_v31 = vunpack.i.h.bf16 %v1211_v30  ;;  %v1212_v32 = vunpack.i.l.bf16 %v1211_v30  ;;  %v1298_v3 = vunpack.i.h.bf16 %v1431_v33  ;;  %v1295_v4 = vunpack.i.l.bf16 %v1431_v33 }
  0xcc   :  { %1049 = vmatmul.mubr.msk.f32.gmra.mxu0 %vm227_vm0, %v1212_v32  ;;  %1097 = vmatmul.mubr.msk.f32.gmra.mxu1 %vm227_vm0, %v1215_v31 }
  0xcd   :  { %v1216_v34 = vpop.trf.xlu0  ;;  %v1435_v37 = vpop.trf.xlu1 }
  0xce   :  { %v1220_v35 = vunpack.i.h.bf16 %v1216_v34  ;;  %v1217_v36 = vunpack.i.l.bf16 %v1216_v34  ;;  %v1303_v7 = vunpack.i.h.bf16 %v1435_v37  ;;  %v1300_v8 = vunpack.i.l.bf16 %v1435_v37 }
  0xd0   :  { %1051 = vmatprep.mubr.msk.f32.mxu0 %vm227_vm0, %v1217_v36  ;;  %1099 = vmatprep.mubr.msk.f32.mxu1 %vm227_vm0, %v1220_v35 }
  0xd1   :  { %v1221_v38 = vpop.trf.xlu0  ;;  %v1439_v41 = vpop.trf.xlu1 }
  0xd2   :  { %v1225_v39 = vunpack.i.h.bf16 %v1221_v38  ;;  %v1222_v40 = vunpack.i.l.bf16 %v1221_v38  ;;  %v1308_v5 = vunpack.i.h.bf16 %v1439_v41  ;;  %v1305_v6 = vunpack.i.l.bf16 %v1439_v41 }
  0xd4   :  { %1052 = vmatmul.mubr.msk.f32.gmra.mxu0 %vm227_vm0, %v1222_v40  ;;  %1100 = vmatmul.mubr.msk.f32.gmra.mxu1 %vm227_vm0, %v1225_v39 }
  0xd5   :  { %1054 = vmatprep.mubr.msk.f32.mxu0 %vm227_vm0, %v1235_v43  ;;  %1102 = vmatprep.mubr.msk.f32.mxu1 %vm227_vm0, %v1238_v42  ;;  %v1309_v46 = vpop.trf.xlu1 }
  0xd6   :  { %v1313_v9 = vunpack.i.h.bf16 %v1309_v46  ;;  %v1310_v10 = vunpack.i.l.bf16 %v1309_v46 }
  0xd8   :  { %1055 = vmatmul.mubr.msk.f32.gmra.mxu0 %vm227_vm0, %v1240_v45  ;;  %1103 = vmatmul.mubr.msk.f32.gmra.mxu1 %vm227_vm0, %v1243_v44 }
  0xd9   :  { %1057 = vmatprep.mubr.msk.f32.mxu0 %vm227_vm0, %v1245_v48  ;;  %1105 = vmatprep.mubr.msk.f32.mxu1 %vm227_vm0, %v1248_v47 }
  0xdc   :  { %1058 = vmatmul.mubr.msk.f32.gmra.mxu0 %vm227_vm0, %v1250_v50  ;;  %1106 = vmatmul.mubr.msk.f32.gmra.mxu1 %vm227_vm0, %v1253_v49 }
  0xdd   :  { %1060 = vmatprep.mubr.msk.f32.mxu0 %vm227_vm0, %v1255_v52  ;;  %1108 = vmatprep.mubr.msk.f32.mxu1 %vm227_vm0, %v1258_v51 }
  0xe0   :  { %1061 = vmatmul.mubr.msk.f32.gmra.mxu0 %vm227_vm0, %v1260_v54  ;;  %1109 = vmatmul.mubr.msk.f32.gmra.mxu1 %vm227_vm0, %v1263_v53 }
  0xe1   :  { %1063 = vmatprep.mubr.msk.f32.mxu0 %vm227_vm0, %v1265_v56  ;;  %1111 = vmatprep.mubr.msk.f32.mxu1 %vm227_vm0, %v1268_v55 }
  0xe4   :  { %1064 = vmatmul.mubr.msk.f32.gmra.mxu0 %vm227_vm0, %v1270_v58  ;;  %1112 = vmatmul.mubr.msk.f32.gmra.mxu1 %vm227_vm0, %v1273_v57 }
  0xe5   :  { %1066 = vmatprep.mubr.msk.f32.mxu0 %vm227_vm0, %v1275_v60  ;;  %1114 = vmatprep.mubr.msk.f32.mxu1 %vm227_vm0, %v1278_v59 }
  0xe8   :  { %1067 = vmatmul.mubr.msk.f32.gmra.mxu0 %vm227_vm0, %v1280_v62  ;;  %1115 = vmatmul.mubr.msk.f32.gmra.mxu1 %vm227_vm0, %v1283_v61 }
  0xe9   :  { %1069 = vmatprep.mubr.msk.f32.mxu0 %vm227_vm0, %v1285_v0  ;;  %1117 = vmatprep.mubr.msk.f32.mxu1 %vm227_vm0, %v1288_v63 }
  0xec   :  { %1070 = vmatmul.mubr.msk.f32.gmra.mxu0 %vm227_vm0, %v1290_v2  ;;  %1118 = vmatmul.mubr.msk.f32.gmra.mxu1 %vm227_vm0, %v1293_v1 }
  0xed   :  { %1072 = vmatprep.mubr.msk.f32.mxu0 %vm227_vm0, %v1295_v4  ;;  %1120 = vmatprep.mubr.msk.f32.mxu1 %vm227_vm0, %v1298_v3 }
  0xf0   :  { %1073 = vmatmul.mubr.msk.f32.gmra.mxu0 %vm227_vm0, %v1300_v8  ;;  %1121 = vmatmul.mubr.msk.f32.gmra.mxu1 %vm227_vm0, %v1303_v7 }
  0xf1   :  { %1075 = vmatprep.mubr.msk.f32.mxu0 %vm227_vm0, %v1305_v6  ;;  %1123 = vmatprep.mubr.msk.f32.mxu1 %vm227_vm0, %v1308_v5 }
  0xf4   :  { %1076 = vmatmul.mubr.msk.f32.gmra.mxu0 %vm227_vm0, %v1310_v10  ;;  %1124 = vmatmul.mubr.msk.f32.gmra.mxu1 %vm227_vm0, %v1313_v9 }
 0x15c   :  { %v1032_v11 = vpop.f32.mrf.mxu0  ;;  %v1080_v12 = vpop.f32.mrf.mxu1 }
 0x15d   :  { %806 = vst [vmem:[%s1699_s2 + $0x8] sm:$0xff] %v1032_v11  ;;  %838 = vst [vmem:[%s1699_s2 + $0x108] sm:$0xff] %v1080_v12 }
 0x15e   :  { %v486_v13 = vpop.f32.mrf.mxu0  ;;  %v646_v14 = vpop.f32.mrf.mxu1 }
 0x15f   :  { %805 = vst [vmem:[%s1699_s2] sm:$0xff] %v486_v13  ;;  %837 = vst [vmem:[%s1699_s2 + $0x100] sm:$0xff] %v646_v14 }
 0x164   :  { %v1035_v15 = vpop.f32.mrf.mxu0  ;;  %v1083_v16 = vpop.f32.mrf.mxu1 }
 0x165   :  { %808 = vst [vmem:[%s1699_s2 + $0x18] sm:$0xff] %v1035_v15  ;;  %840 = vst [vmem:[%s1699_s2 + $0x118] sm:$0xff] %v1083_v16 }
 0x166   :  { %v496_v17 = vpop.f32.mrf.mxu0  ;;  %v656_v18 = vpop.f32.mrf.mxu1 }
 0x167   :  { %807 = vst [vmem:[%s1699_s2 + $0x10] sm:$0xff] %v496_v17  ;;  %839 = vst [vmem:[%s1699_s2 + $0x110] sm:$0xff] %v656_v18 }
 0x16c   :  { %v1038_v19 = vpop.f32.mrf.mxu0  ;;  %v1086_v20 = vpop.f32.mrf.mxu1 }
 0x16d   :  { %810 = vst [vmem:[%s1699_s2 + $0x28] sm:$0xff] %v1038_v19  ;;  %842 = vst [vmem:[%s1699_s2 + $0x128] sm:$0xff] %v1086_v20 }
 0x16e   :  { %v506_v21 = vpop.f32.mrf.mxu0  ;;  %v666_v22 = vpop.f32.mrf.mxu1 }
 0x16f   :  { %809 = vst [vmem:[%s1699_s2 + $0x20] sm:$0xff] %v506_v21  ;;  %841 = vst [vmem:[%s1699_s2 + $0x120] sm:$0xff] %v666_v22 }
 0x174   :  { %v1041_v23 = vpop.f32.mrf.mxu0  ;;  %v1089_v24 = vpop.f32.mrf.mxu1 }
 0x175   :  { %812 = vst [vmem:[%s1699_s2 + $0x38] sm:$0xff] %v1041_v23  ;;  %844 = vst [vmem:[%s1699_s2 + $0x138] sm:$0xff] %v1089_v24 }
 0x176   :  { %v516_v25 = vpop.f32.mrf.mxu0  ;;  %v676_v26 = vpop.f32.mrf.mxu1 }
 0x177   :  { %811 = vst [vmem:[%s1699_s2 + $0x30] sm:$0xff] %v516_v25  ;;  %843 = vst [vmem:[%s1699_s2 + $0x130] sm:$0xff] %v676_v26 }
 0x17c   :  { %v1044_v27 = vpop.f32.mrf.mxu0  ;;  %v1092_v28 = vpop.f32.mrf.mxu1 }
 0x17d   :  { %814 = vst [vmem:[%s1699_s2 + $0x48] sm:$0xff] %v1044_v27  ;;  %846 = vst [vmem:[%s1699_s2 + $0x148] sm:$0xff] %v1092_v28 }
 0x17e   :  { %v526_v29 = vpop.f32.mrf.mxu0  ;;  %v686_v30 = vpop.f32.mrf.mxu1 }
 0x17f   :  { %813 = vst [vmem:[%s1699_s2 + $0x40] sm:$0xff] %v526_v29  ;;  %845 = vst [vmem:[%s1699_s2 + $0x140] sm:$0xff] %v686_v30 }
 0x184   :  { %v1047_v31 = vpop.f32.mrf.mxu0  ;;  %v1095_v32 = vpop.f32.mrf.mxu1 }
 0x185   :  { %816 = vst [vmem:[%s1699_s2 + $0x58] sm:$0xff] %v1047_v31  ;;  %848 = vst [vmem:[%s1699_s2 + $0x158] sm:$0xff] %v1095_v32 }
 0x186   :  { %v536_v33 = vpop.f32.mrf.mxu0  ;;  %v696_v34 = vpop.f32.mrf.mxu1 }
 0x187   :  { %815 = vst [vmem:[%s1699_s2 + $0x50] sm:$0xff] %v536_v33  ;;  %847 = vst [vmem:[%s1699_s2 + $0x150] sm:$0xff] %v696_v34 }
 0x18c   :  { %v1050_v35 = vpop.f32.mrf.mxu0  ;;  %v1098_v36 = vpop.f32.mrf.mxu1 }
 0x18d   :  { %818 = vst [vmem:[%s1699_s2 + $0x68] sm:$0xff] %v1050_v35  ;;  %850 = vst [vmem:[%s1699_s2 + $0x168] sm:$0xff] %v1098_v36 }
 0x18e   :  { %v546_v37 = vpop.f32.mrf.mxu0  ;;  %v706_v38 = vpop.f32.mrf.mxu1 }
 0x18f   :  { %817 = vst [vmem:[%s1699_s2 + $0x60] sm:$0xff] %v546_v37  ;;  %849 = vst [vmem:[%s1699_s2 + $0x160] sm:$0xff] %v706_v38 }
 0x194   :  { %v1053_v39 = vpop.f32.mrf.mxu0  ;;  %v1101_v40 = vpop.f32.mrf.mxu1 }
 0x195   :  { %820 = vst [vmem:[%s1699_s2 + $0x78] sm:$0xff] %v1053_v39  ;;  %852 = vst [vmem:[%s1699_s2 + $0x178] sm:$0xff] %v1101_v40 }
 0x196   :  { %v556_v41 = vpop.f32.mrf.mxu0  ;;  %v716_v42 = vpop.f32.mrf.mxu1 }
 0x197   :  { %819 = vst [vmem:[%s1699_s2 + $0x70] sm:$0xff] %v556_v41  ;;  %851 = vst [vmem:[%s1699_s2 + $0x170] sm:$0xff] %v716_v42 }
 0x198   :  { %v1056_v43 = vpop.f32.mrf.mxu0  ;;  %v1104_v44 = vpop.f32.mrf.mxu1 }
 0x199   :  { %822 = vst [vmem:[%s1699_s2 + $0x88] sm:$0xff] %v1056_v43  ;;  %854 = vst [vmem:[%s1699_s2 + $0x188] sm:$0xff] %v1104_v44 }
 0x19a   :  { %v566_v45 = vpop.f32.mrf.mxu0  ;;  %v726_v46 = vpop.f32.mrf.mxu1 }
 0x19b   :  { %821 = vst [vmem:[%s1699_s2 + $0x80] sm:$0xff] %v566_v45  ;;  %853 = vst [vmem:[%s1699_s2 + $0x180] sm:$0xff] %v726_v46 }
 0x19c   :  { %v1059_v47 = vpop.f32.mrf.mxu0  ;;  %v1107_v48 = vpop.f32.mrf.mxu1 }
 0x19d   :  { %824 = vst [vmem:[%s1699_s2 + $0x98] sm:$0xff] %v1059_v47  ;;  %856 = vst [vmem:[%s1699_s2 + $0x198] sm:$0xff] %v1107_v48 }
 0x19e   :  { %v576_v49 = vpop.f32.mrf.mxu0  ;;  %v736_v50 = vpop.f32.mrf.mxu1 }
 0x19f   :  { %823 = vst [vmem:[%s1699_s2 + $0x90] sm:$0xff] %v576_v49  ;;  %855 = vst [vmem:[%s1699_s2 + $0x190] sm:$0xff] %v736_v50 }
 0x1a0   :  { %v1062_v51 = vpop.f32.mrf.mxu0  ;;  %v1110_v52 = vpop.f32.mrf.mxu1 }
 0x1a1   :  { %826 = vst [vmem:[%s1699_s2 + $0xa8] sm:$0xff] %v1062_v51  ;;  %858 = vst [vmem:[%s1699_s2 + $0x1a8] sm:$0xff] %v1110_v52 }
 0x1a2   :  { %v586_v53 = vpop.f32.mrf.mxu0  ;;  %v746_v54 = vpop.f32.mrf.mxu1 }
 0x1a3   :  { %825 = vst [vmem:[%s1699_s2 + $0xa0] sm:$0xff] %v586_v53  ;;  %857 = vst [vmem:[%s1699_s2 + $0x1a0] sm:$0xff] %v746_v54 }
 0x1a4   :  { %v1065_v55 = vpop.f32.mrf.mxu0  ;;  %v1113_v56 = vpop.f32.mrf.mxu1 }
 0x1a5   :  { %828 = vst [vmem:[%s1699_s2 + $0xb8] sm:$0xff] %v1065_v55  ;;  %860 = vst [vmem:[%s1699_s2 + $0x1b8] sm:$0xff] %v1113_v56 }
 0x1a6   :  { %v596_v57 = vpop.f32.mrf.mxu0  ;;  %v756_v58 = vpop.f32.mrf.mxu1 }
 0x1a7   :  { %827 = vst [vmem:[%s1699_s2 + $0xb0] sm:$0xff] %v596_v57  ;;  %859 = vst [vmem:[%s1699_s2 + $0x1b0] sm:$0xff] %v756_v58 }
 0x1a8   :  { %v1068_v59 = vpop.f32.mrf.mxu0  ;;  %v1116_v60 = vpop.f32.mrf.mxu1 }
 0x1a9   :  { %830 = vst [vmem:[%s1699_s2 + $0xc8] sm:$0xff] %v1068_v59  ;;  %862 = vst [vmem:[%s1699_s2 + $0x1c8] sm:$0xff] %v1116_v60 }
 0x1aa   :  { %v606_v61 = vpop.f32.mrf.mxu0  ;;  %v766_v62 = vpop.f32.mrf.mxu1 }
 0x1ab   :  { %829 = vst [vmem:[%s1699_s2 + $0xc0] sm:$0xff] %v606_v61  ;;  %861 = vst [vmem:[%s1699_s2 + $0x1c0] sm:$0xff] %v766_v62 }
 0x1ac   :  { %v1071_v63 = vpop.f32.mrf.mxu0  ;;  %v1119_v0 = vpop.f32.mrf.mxu1 }
 0x1ad   :  { %832 = vst [vmem:[%s1699_s2 + $0xd8] sm:$0xff] %v1071_v63  ;;  %864 = vst [vmem:[%s1699_s2 + $0x1d8] sm:$0xff] %v1119_v0 }
 0x1ae   :  { %v616_v1 = vpop.f32.mrf.mxu0  ;;  %v776_v2 = vpop.f32.mrf.mxu1 }
 0x1af   :  { %831 = vst [vmem:[%s1699_s2 + $0xd0] sm:$0xff] %v616_v1  ;;  %863 = vst [vmem:[%s1699_s2 + $0x1d0] sm:$0xff] %v776_v2 }
 0x1b0   :  { %v1074_v3 = vpop.f32.mrf.mxu0  ;;  %v1122_v4 = vpop.f32.mrf.mxu1 }
 0x1b1   :  { %834 = vst [vmem:[%s1699_s2 + $0xe8] sm:$0xff] %v1074_v3  ;;  %866 = vst [vmem:[%s1699_s2 + $0x1e8] sm:$0xff] %v1122_v4 }
 0x1b2   :  { %v626_v5 = vpop.f32.mrf.mxu0  ;;  %v786_v6 = vpop.f32.mrf.mxu1 }
 0x1b3   :  { %833 = vst [vmem:[%s1699_s2 + $0xe0] sm:$0xff] %v626_v5  ;;  %865 = vst [vmem:[%s1699_s2 + $0x1e0] sm:$0xff] %v786_v6 }
 0x1b4   :  { %v1077_v7 = vpop.f32.mrf.mxu0  ;;  %v1125_v8 = vpop.f32.mrf.mxu1 }
 0x1b5   :  { %836 = vst [vmem:[%s1699_s2 + $0xf8] sm:$0xff] %v1077_v7  ;;  %868 = vst [vmem:[%s1699_s2 + $0x1f8] sm:$0xff] %v1125_v8 }
 0x1b6   :  { %v636_v9 = vpop.f32.mrf.mxu0  ;;  %v796_v10 = vpop.f32.mrf.mxu1 }
 0x1b7   :  { %835 = vst [vmem:[%s1699_s2 + $0xf0] sm:$0xff] %v636_v9  ;;  %867 = vst [vmem:[%s1699_s2 + $0x1f0] sm:$0xff] %v796_v10 }
 0x1b8   :  { %873 = vsyncpa [#allocation3], 1 }

</bundles_post_ra>
